<compile_context>
chip_gen: v6e
topology: v6e:2x2x1
jax: 0.10.0
libtpu: 0.0.40
codegen_flags: <defaults>
</compile_context>

<pallas_src>
import functools

import jax
import jax.numpy as jnp
from jax.experimental import pallas as pl
from jax.experimental.pallas import tpu as pltpu


def _round_up(a, b):
    return (a + b - 1) // b * b


def _cdiv(a, b):
    return (a + b - 1) // b


def _spec(shape, index_map, buffers=None):
    """BlockSpec helper; uses pipeline_mode=pl.Buffered(n) when supported."""
    if buffers is not None and hasattr(pl, "Buffered"):
        try:
            return pl.BlockSpec(shape, index_map, pipeline_mode=pl.Buffered(buffers))
        except TypeError:
            pass
    return pl.BlockSpec(shape, index_map)


def _vmem_policy():
    """Return (budget_bytes, vmem_limit_bytes, min_grid_steps, tm_cap)."""
    cap = 64 * 1024 * 1024
    try:
        info = pltpu.get_tpu_info()
        cap = int(getattr(info, "vmem_capacity_bytes", cap)) or cap
    except Exception:
        pass
    if cap >= 100 * 1024 * 1024:
        # v5e / v6e: 128 MiB physical VMEM, single TensorCore per chip.
        limit = 100 * 1024 * 1024
        min_steps = 2
        tm_cap = 1024
    else:
        # v7x (64 MiB per core) or unknown: stay conservative per core; give
        # each of the two TensorCores >=2 pipelined steps when M allows.
        limit = 32 * 1024 * 1024
        min_steps = 4
        tm_cap = 512
    budget = limit - 4 * 1024 * 1024  # headroom for Mosaic internal scratch
    return budget, limit, min_steps, tm_cap


def _layernorm_store(y, gamma_ref, beta_ref, o_ref, *, n_valid, eps):
    """LayerNorm over the last axis. Padded columns of y must be exactly 0."""
    n_padded = y.shape[-1]
    inv_n = jnp.float32(1.0 / n_valid)
    mean = jnp.sum(y, axis=-1, keepdims=True) * inv_n          # exact: pads are 0
    centered = y - mean
    sq = jnp.sum(centered * centered, axis=-1, keepdims=True)
    if n_padded != n_valid:
        # Each of the (n_padded - n_valid) zero columns contributes mean^2.
        sq = sq - jnp.float32(n_padded - n_valid) * mean * mean
    var = sq * inv_n
    y_hat = centered * jax.lax.rsqrt(var + jnp.float32(eps))    # rsqrt -> EUP
    o_ref[...] = (y_hat * gamma_ref[...] + beta_ref[...]).astype(o_ref.dtype)


def _resident_kernel(x_ref, w_ref, b_ref, g_ref, be_ref, o_ref, *, n_valid, eps):
    x = x_ref[...].astype(w_ref.dtype)  # f32 -> bf16 cast in-kernel
    y = jnp.dot(x, w_ref[...], preferred_element_type=jnp.float32)
    y = y + b_ref[...]
    _layernorm_store(y, g_ref, be_ref, o_ref, n_valid=n_valid, eps=eps)


def _streaming_kernel(x_ref, w_ref, b_ref, g_ref, be_ref, o_ref, acc_ref, *,
                      n_valid, eps):
    k = pl.program_id(1)

    @pl.when(k == 0)
    def _():
        acc_ref[...] = jnp.zeros_like(acc_ref)

    x = x_ref[...].astype(w_ref.dtype)
    acc_ref[...] += jnp.dot(x, w_ref[...], preferred_element_type=jnp.float32)

    @pl.when(k == pl.num_programs(1) - 1)
    def _():
        y = acc_ref[...] + b_ref[...]
        _layernorm_store(y, g_ref, be_ref, o_ref, n_valid=n_valid, eps=eps)


def prepare_params(w_t, b, gamma, beta, *, compute_dtype=jnp.bfloat16):
    """Pad/cast the static layer parameters once (out of the per-call path).

    w_t: [K, N] (transpose of torch Linear weight), b/gamma/beta: [N].
    """
    K, N = w_t.shape
    Kp, Np = _round_up(K, 128), _round_up(N, 128)
    f32 = jnp.float32
    return {
        "w": jnp.pad(w_t.astype(compute_dtype), ((0, Kp - K), (0, Np - N))),
        "b": jnp.pad(b.astype(f32), (0, Np - N)).reshape(1, Np),
        "gamma": jnp.pad(gamma.astype(f32), (0, Np - N)).reshape(1, Np),
        "beta": jnp.pad(beta.astype(f32), (0, Np - N)).reshape(1, Np),
        "K": K, "N": N, "Kp": Kp, "Np": Np,
    }


def linear_layer(x, params, *, out_dtype=jnp.float32, eps=1e-5,
                 force_streaming=False, tk=None):
    """Fused Linear + LayerNorm.  x: [M, K] float32 -> [M, N] out_dtype."""
    M, K = x.shape
    assert K == params["K"], "x feature dim does not match the prepared weight"
    Kp, Np, N = params["Kp"], params["Np"], params["N"]
    w_p, b_p, g_p, be_p = params["w"], params["b"], params["gamma"], params["beta"]
    w_bytes = jnp.dtype(w_p.dtype).itemsize
    out_bytes = jnp.dtype(out_dtype).itemsize
    x_bytes = jnp.dtype(x.dtype).itemsize

    budget, vmem_limit, min_steps, tm_cap = _vmem_policy()
    Mp16 = _round_up(max(M, 16), 16)

    # --- Resident-weight feasibility -------------------------------------
    # W^T + bias/gamma/beta single-buffered; per row: x tile (2 bufs) +
    # in-kernel bf16 cast temp + out tile (2 bufs).
    fixed = Kp * Np * w_bytes + 3 * Np * 4
    per_row = 2 * Kp * x_bytes + Kp * w_bytes + 2 * Np * out_bytes
    use_resident = (not force_streaming) and (fixed + 16 * per_row <= budget)

    if use_resident:
        tm = max(16, min(tm_cap, (budget - fixed) // per_row // 16 * 16, Mp16))
        ntiles = _cdiv(Mp16, tm)
        if Mp16 >= min_steps * 16:
            ntiles = max(ntiles, min_steps)   # keep the pipeline / both v7x cores busy
        tm = _round_up(_cdiv(Mp16, ntiles), 16)
        Mp = _round_up(Mp16, tm)

        x_p = x if (Mp, Kp) == (M, K) else jnp.pad(x, ((0, Mp - M), (0, Kp - K)))

        cost = pl.CostEstimate(
            flops=2 * Mp * Kp * Np + 10 * Mp * Np,
            transcendentals=Mp,
            bytes_accessed=Mp * Kp * x_bytes + Kp * Np * w_bytes
                           + 3 * Np * 4 + Mp * Np * out_bytes,
        )
        out_p = pl.pallas_call(
            functools.partial(_resident_kernel, n_valid=N, eps=eps),
            out_shape=jax.ShapeDtypeStruct((Mp, Np), out_dtype),
            grid_spec=pltpu.PrefetchScalarGridSpec(
                num_scalar_prefetch=0,
                grid=(Mp // tm,),
                in_specs=[
                    _spec((tm, Kp), lambda i: (i, 0)),             # x tile (pipelined)
                    _spec((Kp, Np), lambda i: (0, 0), buffers=1),  # resident W^T
                    _spec((1, Np), lambda i: (0, 0), buffers=1),   # bias
                    _spec((1, Np), lambda i: (0, 0), buffers=1),   # LN gamma
                    _spec((1, Np), lambda i: (0, 0), buffers=1),   # LN beta
                ],
                out_specs=pl.BlockSpec((tm, Np), lambda i: (i, 0)),
            ),
            compiler_params=pltpu.CompilerParams(
                dimension_semantics=("parallel",),
                vmem_limit_bytes=vmem_limit,
            ),
            cost_estimate=cost,
        )(x_p, w_p, b_p, g_p, be_p)
        return out_p[:M, :N]

    # --- Streaming path: K-tiled grid with an f32 accumulator ------------
    tm = min(256, Mp16)
    if Mp16 >= min_steps * 16:
        tm = min(tm, _round_up(_cdiv(Mp16, min_steps), 16))
    tm = _round_up(tm, 16)

    def _need(tm_, tk_):
        return (3 * Np * 4                                   # bias / gamma / beta
                + 2 * tm_ * tk_ * x_bytes + tm_ * tk_ * w_bytes  # x tiles + cast temp
                + 2 * tk_ * Np * w_bytes                     # streamed W^T tiles
                + tm_ * Np * 4                               # f32 accumulator
                + 2 * tm_ * Np * out_bytes)                  # out tiles

    if tk is not None:
        assert tk % 128 == 0 and Kp % tk == 0, \
            "tk must be a multiple of 128 that divides the padded K"
    else:
        tk = 128
        for cand in reversed([d for d in range(128, Kp + 1, 128) if Kp % d == 0]):
            if _need(tm, cand) <= budget:
                tk = cand
                break
    while _need(tm, tk) > budget and tm > 16:
        tm = max(16, (tm // 2) // 16 * 16)
    assert _need(tm, tk) <= budget, \
        "out_features too large for a single LayerNorm block in VMEM"
    # TODO(synk): for even larger layers, split N with a two-pass LayerNorm.

    Mp = _round_up(Mp16, tm)
    nk = Kp // tk
    x_p = x if (Mp, Kp) == (M, K) else jnp.pad(x, ((0, Mp - M), (0, Kp - K)))

    cost = pl.CostEstimate(
        flops=2 * Mp * Kp * Np + 10 * Mp * Np,
        transcendentals=Mp,
        bytes_accessed=Mp * Kp * x_bytes + (Mp // tm) * Kp * Np * w_bytes
                       + 3 * Np * 4 + Mp * Np * out_bytes,
    )
    out_p = pl.pallas_call(
        functools.partial(_streaming_kernel, n_valid=N, eps=eps),
        out_shape=jax.ShapeDtypeStruct((Mp, Np), out_dtype),
        grid_spec=pltpu.PrefetchScalarGridSpec(
            num_scalar_prefetch=0,
            grid=(Mp // tm, nk),
            in_specs=[
                _spec((tm, tk), lambda i, k: (i, k)),             # x tile
                _spec((tk, Np), lambda i, k: (k, 0)),             # streamed W^T tile
                _spec((1, Np), lambda i, k: (0, 0), buffers=1),   # bias
                _spec((1, Np), lambda i, k: (0, 0), buffers=1),   # LN gamma
                _spec((1, Np), lambda i, k: (0, 0), buffers=1),   # LN beta
            ],
            out_specs=pl.BlockSpec((tm, Np), lambda i, k: (i, 0)),
            scratch_shapes=[pltpu.VMEM((tm, Np), jnp.float32)],
        ),
        compiler_params=pltpu.CompilerParams(
            dimension_semantics=("parallel", "arbitrary"),
            vmem_limit_bytes=vmem_limit,
        ),
        cost_estimate=cost,
    )(x_p, w_p, b_p, g_p, be_p)
    return out_p[:M, :N]


def _reference(x, w_t, b, gamma, beta, eps=1e-5):
    y = x @ w_t + b
    mean = jnp.mean(y, axis=-1, keepdims=True)
    var = jnp.mean((y - mean) ** 2, axis=-1, keepdims=True)
    return (y - mean) / jnp.sqrt(var + eps) * gamma + beta


def _make_case(key, M, K, N):
    kx, kw, kb = jax.random.split(key, 3)
    x = jax.random.normal(kx, (M, K), dtype=jnp.float32)
    bound = 1.0 / (K ** 0.5)            # torch nn.Linear default init bounds
    w = jax.random.uniform(kw, (N, K), jnp.float32, -bound, bound)
    b = jax.random.uniform(kb, (N,), jnp.float32, -bound, bound)
    gamma = jnp.ones((N,), jnp.float32)  # torch nn.LayerNorm defaults
    beta = jnp.zeros((N,), jnp.float32)
    return x, w.T, b, gamma, beta


if __name__ == "__main__":
    key = jax.random.PRNGKey(0)
    k1, k2 = jax.random.split(key)

    # Case 1: resident-weight path (batch=8, in_channels=32, out_channels=64).
    x, w_t, b, gamma, beta = _make_case(k1, 8, 32, 64)
    params = prepare_params(w_t, b, gamma, beta)
    out = jax.block_until_ready(linear_layer(x, params))
    assert out.shape == (8, 64)
    x_r = x.astype(jnp.bfloat16).astype(jnp.float32)
    w_r = w_t.astype(jnp.bfloat16).astype(jnp.float32)
    ref = _reference(x_r, w_r, b, gamma, beta)
    assert jnp.allclose(out, ref, atol=2e-3, rtol=2e-3), "resident path mismatch"

    # Case 2: streaming (K-tiled accumulator) fallback with M/K/N padding
    # (batch=40, in_channels=300, out_channels=72; tk=128 -> 3 K steps).
    x, w_t, b, gamma, beta = _make_case(k2, 40, 300, 72)
    params = prepare_params(w_t, b, gamma, beta)
    out = jax.block_until_ready(
        linear_layer(x, params, force_streaming=True, tk=128))
    assert out.shape == (40, 72)
    x_r = x.astype(jnp.bfloat16).astype(jnp.float32)
    w_r = w_t.astype(jnp.bfloat16).astype(jnp.float32)
    ref = _reference(x_r, w_r, b, gamma, beta)
    assert jnp.allclose(out, ref, atol=2e-3, rtol=2e-3), "streaming path mismatch"

    print("KERNEL_OK")
</pallas_src>

<mosaic_0001>
module attributes {stable_mosaic.version = 11 : i64} {
  func.func @_resident_kernel(%arg0: i32, %arg1: memref<16x128xf32, #tpu.memory_space<vmem>>, %arg2: memref<128x128xbf16, #tpu.memory_space<vmem>>, %arg3: memref<1x128xf32, #tpu.memory_space<vmem>>, %arg4: memref<1x128xf32, #tpu.memory_space<vmem>>, %arg5: memref<1x128xf32, #tpu.memory_space<vmem>>, %arg6: memref<16x128xf32, #tpu.memory_space<vmem>>) attributes {dimension_semantics = [#tpu.dimension_semantics<parallel>], iteration_bounds = array<i64: 1>, scalar_prefetch = 0 : i64, scratch_operands = 0 : i64, tpu.core_type = #tpu.core_type<tc>, window_params = [{transform_indices = @transform_0, window_bounds = array<i64: 16, 128>}, {pipeline_mode = #tpu.pipeline_mode<synchronous>, transform_indices = @transform_1, window_bounds = array<i64: 128, 128>}, {pipeline_mode = #tpu.pipeline_mode<synchronous>, transform_indices = @transform_2, window_bounds = array<i64: 1, 128>}, {pipeline_mode = #tpu.pipeline_mode<synchronous>, transform_indices = @transform_3, window_bounds = array<i64: 1, 128>}, {pipeline_mode = #tpu.pipeline_mode<synchronous>, transform_indices = @transform_4, window_bounds = array<i64: 1, 128>}, {transform_indices = @transform_5, window_bounds = array<i64: 16, 128>}]} {
    %c0 = arith.constant 0 : index
    %c0_0 = arith.constant 0 : index
    %0 = vector.load %arg1[%c0, %c0_0] : memref<16x128xf32, #tpu.memory_space<vmem>>, vector<16x128xf32>
    %1 = arith.truncf %0 : vector<16x128xf32> to vector<16x128xbf16>
    %c0_1 = arith.constant 0 : index
    %c0_2 = arith.constant 0 : index
    %2 = vector.load %arg2[%c0_1, %c0_2] : memref<128x128xbf16, #tpu.memory_space<vmem>>, vector<128x128xbf16>
    %cst = arith.constant dense<0.000000e+00> : vector<16x128xf32>
    %3 = tpu.matmul %1, %2, %cst {dimension_numbers = #tpu.dot_dimension_numbers<[1], [0], [0], [1], [0, 0, 1, 1], [], []>} : vector<16x128xbf16>, vector<128x128xbf16>, vector<16x128xf32> -> vector<16x128xf32>
    %c0_3 = arith.constant 0 : index
    %c0_4 = arith.constant 0 : index
    %4 = vector.load %arg3[%c0_3, %c0_4] : memref<1x128xf32, #tpu.memory_space<vmem>>, vector<1x128xf32>
    %5 = vector.broadcast %4 : vector<1x128xf32> to vector<16x128xf32>
    %6 = arith.addf %3, %5 : vector<16x128xf32>
    %cst_5 = arith.constant dense<0.000000e+00> : vector<16xf32>
    %7 = vector.multi_reduction <add>, %6, %cst_5 [1] : vector<16x128xf32> to vector<16xf32>
    %8 = vector.shape_cast %7 : vector<16xf32> to vector<16x1xf32>
    %cst_6 = arith.constant 1.562500e-02 : f32
    %9 = vector.broadcast %cst_6 : f32 to vector<16x1xf32>
    %10 = arith.mulf %8, %9 : vector<16x1xf32>
    %11 = vector.broadcast %10 : vector<16x1xf32> to vector<16x128xf32>
    %12 = arith.subf %6, %11 : vector<16x128xf32>
    %13 = arith.mulf %12, %12 : vector<16x128xf32>
    %cst_7 = arith.constant dense<0.000000e+00> : vector<16xf32>
    %14 = vector.multi_reduction <add>, %13, %cst_7 [1] : vector<16x128xf32> to vector<16xf32>
    %15 = vector.shape_cast %14 : vector<16xf32> to vector<16x1xf32>
    %cst_8 = arith.constant 6.400000e+01 : f32
    %16 = vector.broadcast %cst_8 : f32 to vector<16x1xf32>
    %17 = arith.mulf %16, %10 : vector<16x1xf32>
    %18 = arith.mulf %17, %10 : vector<16x1xf32>
    %19 = arith.subf %15, %18 : vector<16x1xf32>
    %cst_9 = arith.constant 1.562500e-02 : f32
    %20 = vector.broadcast %cst_9 : f32 to vector<16x1xf32>
    %21 = arith.mulf %19, %20 : vector<16x1xf32>
    %cst_10 = arith.constant 9.99999974E-6 : f32
    %22 = vector.broadcast %cst_10 : f32 to vector<16x1xf32>
    %23 = arith.addf %21, %22 : vector<16x1xf32>
    %24 = math.rsqrt %23 : vector<16x1xf32>
    %25 = vector.broadcast %24 : vector<16x1xf32> to vector<16x128xf32>
    %26 = arith.mulf %12, %25 : vector<16x128xf32>
    %c0_11 = arith.constant 0 : index
    %c0_12 = arith.constant 0 : index
    %27 = vector.load %arg4[%c0_11, %c0_12] : memref<1x128xf32, #tpu.memory_space<vmem>>, vector<1x128xf32>
    %28 = vector.broadcast %27 : vector<1x128xf32> to vector<16x128xf32>
    %29 = arith.mulf %26, %28 : vector<16x128xf32>
    %c0_13 = arith.constant 0 : index
    %c0_14 = arith.constant 0 : index
    %30 = vector.load %arg5[%c0_13, %c0_14] : memref<1x128xf32, #tpu.memory_space<vmem>>, vector<1x128xf32>
    %31 = vector.broadcast %30 : vector<1x128xf32> to vector<16x128xf32>
    %32 = arith.addf %29, %31 : vector<16x128xf32>
    %c0_15 = arith.constant 0 : index
    %c0_16 = arith.constant 0 : index
    %33 = vector.load %arg6[%c0_15, %c0_16] : memref<16x128xf32, #tpu.memory_space<vmem>>, vector<16x128xf32>
    tpu.vector_store %arg6[%c0_15, %c0_16], %32 {strides = array<i32>} : memref<16x128xf32, #tpu.memory_space<vmem>>, vector<16x128xf32>,
    return
  }
  func.func @transform_0(%arg0: i32) -> (i32, i32) {
    %c0_i32 = arith.constant 0 : i32
    %c0_i32_0 = arith.constant 0 : i32
    return %arg0, %c0_i32 : i32, i32
  }
  func.func @transform_1(%arg0: i32) -> (i32, i32) {
    %c0_i32 = arith.constant 0 : i32
    %c0_i32_0 = arith.constant 0 : i32
    %c0_i32_1 = arith.constant 0 : i32
    return %c0_i32, %c0_i32_0 : i32, i32
  }
  func.func @transform_2(%arg0: i32) -> (i32, i32) {
    %c0_i32 = arith.constant 0 : i32
    %c0_i32_0 = arith.constant 0 : i32
    %c0_i32_1 = arith.constant 0 : i32
    return %c0_i32, %c0_i32_0 : i32, i32
  }
  func.func @transform_3(%arg0: i32) -> (i32, i32) {
    %c0_i32 = arith.constant 0 : i32
    %c0_i32_0 = arith.constant 0 : i32
    %c0_i32_1 = arith.constant 0 : i32
    return %c0_i32, %c0_i32_0 : i32, i32
  }
  func.func @transform_4(%arg0: i32) -> (i32, i32) {
    %c0_i32 = arith.constant 0 : i32
    %c0_i32_0 = arith.constant 0 : i32
    %c0_i32_1 = arith.constant 0 : i32
    return %c0_i32, %c0_i32_0 : i32, i32
  }
  func.func @transform_5(%arg0: i32) -> (i32, i32) {
    %c0_i32 = arith.constant 0 : i32
    %c0_i32_0 = arith.constant 0 : i32
    return %arg0, %c0_i32 : i32, i32
  }
}

</mosaic_0001>

<bundles_post_ra>
// kernel: tpu_custom_call.1
= control target key start
LH: loop header
LB: loop body
LE: loop exit
PB: predicated region body
PF: predicated region fallthrough
CT: control target
= control target key end

     0   :  { %10 = vsyncpa [#allocation3], 0  ;;  %s421_s0 = inlined_call_operand.hbm [shape: f32[16,128], index: 0, kind: input, shape index: {}]   ;;  %s422_s1 = inlined_call_operand.hbm [shape: bf16[128,128], index: 1, kind: input, shape index: {}]   ;;  %s423_s2 = inlined_call_operand.vmem [shape: f32[1,128], index: 2, kind: input, shape index: {}]   ;;  %s424_s3 = inlined_call_operand.vmem [shape: f32[1,128], index: 3, kind: input, shape index: {}]   ;;  %s425_s4 = inlined_call_operand.vmem [shape: f32[1,128], index: 4, kind: input, shape index: {}]   ;;  %s426_s5 = inlined_call_operand.hbm [shape: f32[16,128], index: 5, kind: output, shape index: {}]  }
   0x1   :  { %11 = vsyncpa [#allocation6], 0 }
   0x2   :  { %12 = vsyncpa [#allocation4], 0  ;;  %s358_s18 = smov [#allocation2]  }
   0x3   :  { %s18_s19 = sshll.u32 %s358_s18, 4  ;;  %s19_s19 = int_to_ptr.vmem [resolvable:$true] %s18_s19 }
   0x4   :  { %s300_s20 = scalar_lea.vmem %s19_s19, 256  ;;  %p305_p1 = scmp.lt.s32.totalorder %s19_s19, %s19_s19 }
   0x5   :  { %p301_p0 = scmp.ne.s32.totalorder %s19_s19, %s300_s20  ;;  %p306_p2 = scmp.lt.s32.totalorder %s300_s20, %s300_s20 }
   0x7   :  { %p307_p3 = por %p306_p2, %p305_p1 }
   0x9   :  { %p308_p4 = pnand %p307_p3, %p301_p0 }
   0xb   :  { %311 = shalt.err (!%p308_p4)
}
   0xc   :  { %s359_s21 = smov 128   ;;  %s360_s22 = smov 8  }
   0xd   :  { %24 = dma.hbm_to_vmem [thread:$0]  %s421_s0, 256, %s19_s19, [#allocation3], %s359_s21, %s359_s21, %s360_s22  }
   0xe   :  { %s361_s25 = smov [#allocation5]  }
   0xf   :  { %s30_s26 = sshll.u32 %s361_s25, 4  ;;  %s31_s26 = int_to_ptr.vmem [resolvable:$true] %s30_s26 }
  0x10   :  { %s320_s27 = scalar_lea.vmem %s31_s26, 1024  ;;  %p325_p6 = scmp.lt.s32.totalorder %s31_s26, %s31_s26 }
  0x11   :  { %p321_p5 = scmp.ne.s32.totalorder %s31_s26, %s320_s27  ;;  %p326_p7 = scmp.lt.s32.totalorder %s320_s27, %s320_s27 }
  0x13   :  { %p327_p8 = por %p326_p7, %p325_p6 }
  0x15   :  { %p328_p9 = pnand %p327_p8, %p321_p5 }
  0x17   :  { %331 = shalt.err (!%p328_p9)
}
  0x18   :  { %s362_s28 = smov 64   ;;  %s363_s29 = smov 4  }
  0x19   :  { %36 = dma.hbm_to_vmem [thread:$0]  %s422_s1, 1024, %s31_s26, [#allocation6], %s362_s28, %s362_s28, %s363_s29  }
  0x1a   :  { %352 = dma.done.wait [#allocation3], 256  }
  0x1b   :  { %353 = vsyncadd [#allocation3], 4294967040 }
  0x1c   :  { %354 = dma.done.wait [#allocation6], 1024  }
  0x1d   :  { %355 = vsyncadd [#allocation6], 4294966272  ;;  %v364_v0 = vmov 0.0   ;;  %vm365_vm0 = vmmov 0   ;;  %v280_v1 = vld [vmem:[#allocation5 + $0x38] sm:$0xff]   ;;  %v281_v2 = vld [vmem:[#allocation5 + $0x30] sm:$0xff]  }
  0x1e   :  { %251 = vmatprep.subr.bf16.mxu0 %v364_v0  ;;  %267 = vmatprep.mubr.msk.bf16.mxu0 %vm365_vm0, %v364_v0  ;;  %v282_v3 = vld [vmem:[#allocation5 + $0x28] sm:$0xff]   ;;  %v283_v4 = vld [vmem:[#allocation5 + $0x20] sm:$0xff]   ;;  %v284_v5 = vld [vmem:[#allocation5 + $0x18] sm:$0xff]   ;;  %s366_s10 = smov [#allocation7]  }
  0x1f   :  { %252 = vmatpush3.bf16.msra.mxu0 %v280_v1  ;;  %v285_v6 = vld [vmem:[#allocation5 + $0x10] sm:$0xff]   ;;  %v286_v7 = vld [vmem:[#allocation5 + $0x8] sm:$0xff]   ;;  %v287_v8 = vld [vmem:[#allocation5] sm:$0xff]   ;;  %s218_s11 = sshll.u32 %s366_s10, 4  ;;  %s219_s11 = int_to_ptr.vmem [resolvable:$true] %s218_s11 }
  0x20   :  { %253 = vmatprep.subr.bf16.mxu0 %v364_v0  ;;  %v50_v9 = vld [vmem:[#allocation2] sm:$0xff]  ;;  %v51_v10 = vld [vmem:[#allocation2 + $0x8] sm:$0xff]  ;;  %s332_s12 = scalar_lea.vmem %s219_s11, 256  ;;  %p337_p11 = scmp.lt.s32.totalorder %s219_s11, %s219_s11 }
  0x21   :  { %v52_v11 = vpack.c.bf16 %v51_v10, %v50_v9  ;;  %v231_v12 = vld [vmem:[%s423_s2] ss:$0 sm:$0xff]  ;;  %p333_p10 = scmp.ne.s32.totalorder %s219_s11, %s332_s12  ;;  %p338_p12 = scmp.lt.s32.totalorder %s332_s12, %s332_s12 }
  0x22   :  { %v240_v40 = vld [vmem:[%s424_s3] ss:$0 sm:$0xff] }
  0x23   :  { %254 = vmatpush3.bf16.msra.mxu0 %v281_v2  ;;  %v241_v42 = vld [vmem:[%s425_s4] ss:$0 sm:$0xff]  ;;  %p339_p13 = por %p338_p12, %p337_p11 }
  0x24   :  { %255 = vmatprep.subr.bf16.mxu0 %v364_v0 }
  0x25   :  { %p340_p0 = pnand %p339_p13, %p333_p10 }
  0x27   :  { %256 = vmatpush3.bf16.msra.mxu0 %v282_v3 }
  0x28   :  { %257 = vmatprep.subr.bf16.mxu0 %v364_v0 }
  0x2b   :  { %258 = vmatpush3.bf16.msra.mxu0 %v283_v4 }
  0x2c   :  { %259 = vmatprep.subr.bf16.mxu0 %v364_v0 }
  0x2f   :  { %260 = vmatpush3.bf16.msra.mxu0 %v284_v5 }
  0x30   :  { %261 = vmatprep.subr.bf16.mxu0 %v364_v0 }
  0x33   :  { %262 = vmatpush3.bf16.msra.mxu0 %v285_v6 }
  0x34   :  { %263 = vmatprep.subr.bf16.mxu0 %v364_v0 }
  0x37   :  { %264 = vmatpush3.bf16.msra.mxu0 %v286_v7 }
  0x38   :  { %265 = vmatprep.subr.bf16.mxu0 %v364_v0 }
  0x3b   :  { %266 = vmatpush3.bf16.msra.mxu0 %v287_v8 }
  0x3e   :  { %268 = vmatmul.mubr.bf16.vlgmr.msra.gmra.mxu0 %v52_v11 }
  0xfe   :  { %v158_v13 = vpop.f32.mrf.mxu0 }
  0xff   :  { %v159_v14 = vadd.f32 %v231_v12, %v158_v13 }
 0x100   :  { %v269_v15 = vpop.f32.mrf.mxu0 }
 0x101   :  { %165 = vadd.xlane.f32.xlu0 %v159_v14 }
 0x102   :  { %v161_v16 = vpop.f32.mrf.mxu0 }
 0x103   :  { %v162_v17 = vadd.f32 %v231_v12, %v161_v16 }
 0x104   :  { %v270_v18 = vpop.f32.mrf.mxu0 }
 0x105   :  { %167 = vadd.xlane.f32.xlu0 %v162_v17 }
 0x18a   :  { %v166_v19 = vpop.xlane.xlu0 %165 }
 0x18b   :  { %v169_v20 = vmul.f32 0.015625, %v166_v19 }
 0x18d   :  { %v171_v21 = vsub.f32 %v159_v14, %v169_v20  ;;  %v179_v27 = vmul.f32 64.0, %v169_v20 }
 0x18e   :  { %v168_v22 = vpop.xlane.xlu0 %167 }
 0x18f   :  { %v170_v23 = vmul.f32 0.015625, %v168_v22  ;;  %v173_v24 = vmul.f32 %v171_v21, %v171_v21  ;;  %v181_v29 = vmul.f32 %v179_v27, %v169_v20 }
 0x191   :  { %175 = vadd.xlane.f32.xlu1 %v173_v24  ;;  %v172_v25 = vsub.f32 %v162_v17, %v170_v23  ;;  %v180_v28 = vmul.f32 64.0, %v170_v23 }
 0x193   :  { %v174_v26 = vmul.f32 %v172_v25, %v172_v25  ;;  %v182_v33 = vmul.f32 %v180_v28, %v170_v23 }
 0x195   :  { %177 = vadd.xlane.f32.xlu1 %v174_v26 }
 0x21a   :  { %v176_v30 = vpop.xlane.xlu1 %175 }
 0x21b   :  { %v183_v31 = vsub.f32 %v176_v30, %v181_v29 }
 0x21d   :  { %v185_v32 = vmul.f32 0.015625, %v183_v31 }
 0x21e   :  { %v178_v34 = vpop.xlane.xlu1 %177 }
 0x21f   :  { %v187_v35 = vadd.f32 1e-05, %v185_v32  ;;  %v184_v36 = vsub.f32 %v178_v34, %v182_v33 }
 0x221   :  { %288 = vrsqrt.f32 %v187_v35  ;;  %v186_v37 = vmul.f32 0.015625, %v184_v36 }
 0x223   :  { %v188_v38 = vadd.f32 1e-05, %v186_v37 }
 0x225   :  { %290 = vrsqrt.f32 %v188_v38 }
 0x22e   :  { %v289_v39 = vpop.eup %288 }
 0x22f   :  { %v191_v41 = vmul.f32 %v289_v39, %v171_v21 }
 0x231   :  { %v200_v43 = vmul.f32 %v240_v40, %v191_v41 }
 0x232   :  { %v291_v44 = vpop.eup %290 }
 0x233   :  { %v192_v45 = vmul.f32 %v291_v44, %v172_v25  ;;  %v209_v46 = vadd.f32 %v241_v42, %v200_v43 }
 0x235   :  { %v201_v47 = vmul.f32 %v240_v40, %v192_v45  ;;  %211 = vst [vmem:[#allocation7] sm:$0xff] %v209_v46 }
 0x237   :  { %v210_v48 = vadd.f32 %v241_v42, %v201_v47 }
 0x239   :  { %212 = vst [vmem:[#allocation7 + $0x8] sm:$0xff] %v210_v48 }
 0x23a   :  { %343 = shalt.err (!%p340_p0)
}
 0x23b   :  { %224 = dma.vmem_to_hbm [thread:$0]  %s219_s11, 256, %s426_s5, [#allocation4], %s359_s21, %s359_s21, %s360_s22  }
 0x23c   :  { %356 = dma.done.wait [#allocation4], 256  }
 0x23d   :  { %357 = vsyncadd [#allocation4], 4294967040 }
 0x23e   :  { %228 = vsyncpa [#allocation3], 1 }
 0x23f   :  { %229 = vsyncpa [#allocation6], 1 }
 0x240   :  { %230 = vsyncpa [#allocation4], 1 }

</bundles_post_ra>
